<compile_context>
chip_gen: v5e
topology: v5e:2x2
jax: 0.10.0
libtpu: 0.0.40
codegen_flags: <defaults>
</compile_context>

<pallas_src>
import functools

import jax
import jax.numpy as jnp
from jax import lax
from jax.experimental import pallas as pl
from jax.experimental.pallas import tpu as pltpu


# ---------------------------------------------------------------------------
# Fused kernel: qkv proj + multi-head softmax attention + merge + out proj
# ---------------------------------------------------------------------------
def _fused_attention_kernel(x_ref, w_qkv_ref, w_out_ref, b_out_ref, o_ref, *,
                            heads, dim_head, scale):
    # x_ref:     (1, N, dim)   block for the current batch element
    # w_qkv_ref: (dim, 3*inner)
    # w_out_ref: (inner, dim)
    # b_out_ref: (1, dim)
    # o_ref:     (1, N, dim)
    inner = heads * dim_head
    x = x_ref[0]                                                    # (N, dim)

    # 1) Fused qkv projection: one MXU matmul covering q, k, v for all heads.
    qkv = jnp.dot(x, w_qkv_ref[...],
                  preferred_element_type=jnp.float32)               # (N, 3*inner)

    # 2) Split q/k/v on lane-aligned (multiple-of-inner) boundaries; scale q once
    #    for all heads (single vectorized multiply over N*inner elements).
    q_all = qkv[:, :inner] * scale                                   # (N, inner)
    k_all = qkv[:, inner:2 * inner]                                  # (N, inner)
    v_all = qkv[:, 2 * inner:]                                       # (N, inner)

    # 3) Per-head softmax attention, fully in vregs/VMEM (static unrolled loop).
    ctx_heads = []
    for h in range(heads):
        lo = h * dim_head
        q = q_all[:, lo:lo + dim_head]                               # (N, d)
        k = k_all[:, lo:lo + dim_head]                               # (N, d)
        v = v_all[:, lo:lo + dim_head]                               # (N, d)

        # q @ k^T via dot_general contracting on d (no explicit transpose).
        scores = lax.dot_general(
            q, k, dimension_numbers=(((1,), (1,)), ((), ())),
            preferred_element_type=jnp.float32)                      # (N, N)

        m = jnp.max(scores, axis=-1, keepdims=True)
        e = jnp.exp(scores - m)
        denom = jnp.sum(e, axis=-1, keepdims=True)
        attn = e * pl.reciprocal(denom, approx=True)                 # softmax(dim=-1), EUP recip
        ctx_heads.append(
            jnp.dot(attn, v, preferred_element_type=jnp.float32))    # (N, d)

    # 4) Merge heads ('b h n d -> b n (h d)') and output projection + bias.
    ctx = jnp.concatenate(ctx_heads, axis=-1)                        # (N, inner)
    out = jnp.dot(ctx, w_out_ref[...],
                  preferred_element_type=jnp.float32) + b_out_ref[...]
    o_ref[0] = out.astype(o_ref.dtype)                               # lane-dense (N, dim) store


# ---------------------------------------------------------------------------
# Module-equivalent forward
# ---------------------------------------------------------------------------
def attention_forward(x, params, heads, dim_head):
    """x: (B, N, dim) -> (B, N, dim)."""
    B, N, dim = x.shape
    inner = heads * dim_head
    scale = dim_head ** (-0.5)

    w_qkv = params["w_qkv"]                  # (dim, 3*inner)  (== PyTorch weight.T)
    w_out = params["w_out"]                  # (inner, dim)
    b_out = params["b_out"].reshape(1, dim)  # (1, dim)

    kern = functools.partial(_fused_attention_kernel,
                             heads=heads, dim_head=dim_head, scale=scale)

    # Advisory cost hint for XLA's scheduler around the custom call.
    flops = (2 * B * N * dim * 3 * inner            # qkv projection
             + 2 * B * heads * N * N * dim_head     # q @ k^T
             + 2 * B * heads * N * N * dim_head     # attn @ v
             + 2 * B * N * inner * dim)             # output projection
    transcendentals = B * heads * N * (N + 1)       # exp + reciprocal
    bytes_accessed = 4 * (x.size + w_qkv.size + w_out.size + b_out.size + B * N * dim)

    return pl.pallas_call(
        kern,
        out_shape=jax.ShapeDtypeStruct((B, N, dim), x.dtype),
        grid=(B,),
        in_specs=[
            pl.BlockSpec((1, N, dim), lambda b: (b, 0, 0)),          # x: one batch element / step
            pl.BlockSpec((dim, 3 * inner), lambda b: (0, 0)),        # weights resident across grid
            pl.BlockSpec((inner, dim), lambda b: (0, 0)),
            pl.BlockSpec((1, dim), lambda b: (0, 0)),
        ],
        out_specs=pl.BlockSpec((1, N, dim), lambda b: (b, 0, 0)),
        compiler_params=pltpu.CompilerParams(
            dimension_semantics=("parallel",),                       # 2 TCs on v7x; no-op v5e/v6e
        ),
        cost_estimate=pl.CostEstimate(
            flops=int(flops),
            transcendentals=int(transcendentals),
            bytes_accessed=int(bytes_accessed)),
    )(x, w_qkv, w_out, b_out)


# Pure-JAX reference (mirrors the PyTorch forward) for a correctness check.
def attention_reference(x, params, heads, dim_head):
    B, N, dim = x.shape
    inner = heads * dim_head
    scale = dim_head ** (-0.5)
    qkv = x @ params["w_qkv"]                                        # (B, N, 3*inner)
    q, k, v = jnp.split(qkv, 3, axis=-1)

    def to_heads(t):
        return t.reshape(B, N, heads, dim_head).transpose(0, 2, 1, 3)

    q, k, v = map(to_heads, (q, k, v))
    dots = jnp.einsum("bhnd,bhmd->bhnm", q, k) * scale
    attn = jax.nn.softmax(dots, axis=-1)
    out = jnp.einsum("bhnm,bhmd->bhnd", attn, v)
    out = out.transpose(0, 2, 1, 3).reshape(B, N, inner)
    return out @ params["w_out"] + params["b_out"]


# ---------------------------------------------------------------------------
# Main
# ---------------------------------------------------------------------------
if __name__ == "__main__":
    # Small shapes consistent with the module, chosen lane-dense (dim, inner multiples of 128).
    B, N = 2, 8               # batch, sequence length
    dim = 128                 # model dim
    heads, dim_head = 4, 32
    inner = heads * dim_head  # 128

    key = jax.random.PRNGKey(0)
    k_x, k_qkv, k_out, k_b = jax.random.split(key, 4)

    x = jax.random.normal(k_x, (B, N, dim), dtype=jnp.float32)

    # Deterministic synthetic parameters (PyTorch Linear weight is (out,in); stored transposed).
    params = {
        "w_qkv": jax.random.normal(k_qkv, (dim, 3 * inner), dtype=jnp.float32) * 0.05,
        "w_out": jax.random.normal(k_out, (inner, dim), dtype=jnp.float32) * 0.05,
        "b_out": jax.random.normal(k_b, (dim,), dtype=jnp.float32) * 0.05,
    }

    y = attention_forward(x, params, heads, dim_head)
    y = jax.block_until_ready(y)

    y_ref = attention_reference(x, params, heads, dim_head)
    assert y.shape == (B, N, dim)
    # approx reciprocal (EUP vrcp) gives ~1e-4 relative error; tolerance reflects that.
    assert jnp.allclose(y, y_ref, atol=5e-3, rtol=5e-3), "mismatch vs reference"

    print("KERNEL_OK")
</pallas_src>

<mosaic_0001>
module attributes {stable_mosaic.version = 11 : i64} {
  func.func @_fused_attention_kernel(%arg0: i32, %arg1: memref<1x8x128xf32, #tpu.memory_space<vmem>>, %arg2: memref<128x384xf32, #tpu.memory_space<vmem>>, %arg3: memref<128x128xf32, #tpu.memory_space<vmem>>, %arg4: memref<1x128xf32, #tpu.memory_space<vmem>>, %arg5: memref<1x8x128xf32, #tpu.memory_space<vmem>>) attributes {dimension_semantics = [#tpu.dimension_semantics<parallel>], iteration_bounds = array<i64: 2>, scalar_prefetch = 0 : i64, scratch_operands = 0 : i64, tpu.core_type = #tpu.core_type<tc>, window_params = [{transform_indices = @transform_0, window_bounds = array<i64: 1, 8, 128>}, {pipeline_mode = #tpu.pipeline_mode<synchronous>, transform_indices = @transform_1, window_bounds = array<i64: 128, 384>}, {pipeline_mode = #tpu.pipeline_mode<synchronous>, transform_indices = @transform_2, window_bounds = array<i64: 128, 128>}, {pipeline_mode = #tpu.pipeline_mode<synchronous>, transform_indices = @transform_3, window_bounds = array<i64: 1, 128>}, {transform_indices = @transform_4, window_bounds = array<i64: 1, 8, 128>}]} {
    %c0 = arith.constant 0 : index
    %c0_0 = arith.constant 0 : index
    %c0_1 = arith.constant 0 : index
    %0 = vector.load %arg1[%c0, %c0_0, %c0_1] : memref<1x8x128xf32, #tpu.memory_space<vmem>>, vector<1x8x128xf32>
    %1 = vector.shape_cast %0 : vector<1x8x128xf32> to vector<8x128xf32>
    %c0_2 = arith.constant 0 : index
    %c0_3 = arith.constant 0 : index
    %2 = vector.load %arg2[%c0_2, %c0_3] : memref<128x384xf32, #tpu.memory_space<vmem>>, vector<128x384xf32>
    %cst = arith.constant dense<0.000000e+00> : vector<8x384xf32>
    %3 = tpu.matmul %1, %2, %cst {dimension_numbers = #tpu.dot_dimension_numbers<[1], [0], [0], [1], [0, 0, 1, 1], [], []>} : vector<8x128xf32>, vector<128x384xf32>, vector<8x384xf32> -> vector<8x384xf32>
    %4 = vector.extract_strided_slice %3 {offsets = [0, 0], sizes = [8, 128], strides = [1, 1]} : vector<8x384xf32> to vector<8x128xf32>
    %cst_4 = arith.constant 0.176776692 : f32
    %5 = vector.broadcast %cst_4 : f32 to vector<8x128xf32>
    %6 = arith.mulf %4, %5 : vector<8x128xf32>
    %7 = vector.extract_strided_slice %3 {offsets = [0, 128], sizes = [8, 128], strides = [1, 1]} : vector<8x384xf32> to vector<8x128xf32>
    %8 = vector.extract_strided_slice %3 {offsets = [0, 256], sizes = [8, 128], strides = [1, 1]} : vector<8x384xf32> to vector<8x128xf32>
    %9 = vector.extract_strided_slice %6 {offsets = [0, 0], sizes = [8, 32], strides = [1, 1]} : vector<8x128xf32> to vector<8x32xf32>
    %10 = vector.extract_strided_slice %7 {offsets = [0, 0], sizes = [8, 32], strides = [1, 1]} : vector<8x128xf32> to vector<8x32xf32>
    %11 = vector.extract_strided_slice %8 {offsets = [0, 0], sizes = [8, 32], strides = [1, 1]} : vector<8x128xf32> to vector<8x32xf32>
    %cst_5 = arith.constant dense<0.000000e+00> : vector<8x8xf32>
    %12 = tpu.matmul %9, %10, %cst_5 {dimension_numbers = #tpu.dot_dimension_numbers<[1], [1], [0], [0], [0, 0, 1, 0], [], []>} : vector<8x32xf32>, vector<8x32xf32>, vector<8x8xf32> -> vector<8x8xf32>
    %cst_6 = arith.constant dense<0xFF800000> : vector<8xf32>
    %13 = vector.multi_reduction <maximumf>, %12, %cst_6 [1] : vector<8x8xf32> to vector<8xf32>
    %14 = vector.shape_cast %13 : vector<8xf32> to vector<8x1xf32>
    %15 = vector.broadcast %14 : vector<8x1xf32> to vector<8x8xf32>
    %16 = arith.subf %12, %15 : vector<8x8xf32>
    %17 = math.exp %16 : vector<8x8xf32>
    %cst_7 = arith.constant dense<0.000000e+00> : vector<8xf32>
    %18 = vector.multi_reduction <add>, %17, %cst_7 [1] : vector<8x8xf32> to vector<8xf32>
    %19 = vector.shape_cast %18 : vector<8xf32> to vector<8x1xf32>
    %20 = tpu.reciprocal %19 {approx = true} : vector<8x1xf32> -> vector<8x1xf32>
    %21 = vector.broadcast %20 : vector<8x1xf32> to vector<8x8xf32>
    %22 = arith.mulf %17, %21 : vector<8x8xf32>
    %cst_8 = arith.constant dense<0.000000e+00> : vector<8x32xf32>
    %23 = tpu.matmul %22, %11, %cst_8 {dimension_numbers = #tpu.dot_dimension_numbers<[1], [0], [0], [1], [0, 0, 1, 1], [], []>} : vector<8x8xf32>, vector<8x32xf32>, vector<8x32xf32> -> vector<8x32xf32>
    %24 = vector.extract_strided_slice %6 {offsets = [0, 32], sizes = [8, 32], strides = [1, 1]} : vector<8x128xf32> to vector<8x32xf32>
    %25 = vector.extract_strided_slice %7 {offsets = [0, 32], sizes = [8, 32], strides = [1, 1]} : vector<8x128xf32> to vector<8x32xf32>
    %26 = vector.extract_strided_slice %8 {offsets = [0, 32], sizes = [8, 32], strides = [1, 1]} : vector<8x128xf32> to vector<8x32xf32>
    %cst_9 = arith.constant dense<0.000000e+00> : vector<8x8xf32>
    %27 = tpu.matmul %24, %25, %cst_9 {dimension_numbers = #tpu.dot_dimension_numbers<[1], [1], [0], [0], [0, 0, 1, 0], [], []>} : vector<8x32xf32>, vector<8x32xf32>, vector<8x8xf32> -> vector<8x8xf32>
    %cst_10 = arith.constant dense<0xFF800000> : vector<8xf32>
    %28 = vector.multi_reduction <maximumf>, %27, %cst_10 [1] : vector<8x8xf32> to vector<8xf32>
    %29 = vector.shape_cast %28 : vector<8xf32> to vector<8x1xf32>
    %30 = vector.broadcast %29 : vector<8x1xf32> to vector<8x8xf32>
    %31 = arith.subf %27, %30 : vector<8x8xf32>
    %32 = math.exp %31 : vector<8x8xf32>
    %cst_11 = arith.constant dense<0.000000e+00> : vector<8xf32>
    %33 = vector.multi_reduction <add>, %32, %cst_11 [1] : vector<8x8xf32> to vector<8xf32>
    %34 = vector.shape_cast %33 : vector<8xf32> to vector<8x1xf32>
    %35 = tpu.reciprocal %34 {approx = true} : vector<8x1xf32> -> vector<8x1xf32>
    %36 = vector.broadcast %35 : vector<8x1xf32> to vector<8x8xf32>
    %37 = arith.mulf %32, %36 : vector<8x8xf32>
    %cst_12 = arith.constant dense<0.000000e+00> : vector<8x32xf32>
    %38 = tpu.matmul %37, %26, %cst_12 {dimension_numbers = #tpu.dot_dimension_numbers<[1], [0], [0], [1], [0, 0, 1, 1], [], []>} : vector<8x8xf32>, vector<8x32xf32>, vector<8x32xf32> -> vector<8x32xf32>
    %39 = vector.extract_strided_slice %6 {offsets = [0, 64], sizes = [8, 32], strides = [1, 1]} : vector<8x128xf32> to vector<8x32xf32>
    %40 = vector.extract_strided_slice %7 {offsets = [0, 64], sizes = [8, 32], strides = [1, 1]} : vector<8x128xf32> to vector<8x32xf32>
    %41 = vector.extract_strided_slice %8 {offsets = [0, 64], sizes = [8, 32], strides = [1, 1]} : vector<8x128xf32> to vector<8x32xf32>
    %cst_13 = arith.constant dense<0.000000e+00> : vector<8x8xf32>
    %42 = tpu.matmul %39, %40, %cst_13 {dimension_numbers = #tpu.dot_dimension_numbers<[1], [1], [0], [0], [0, 0, 1, 0], [], []>} : vector<8x32xf32>, vector<8x32xf32>, vector<8x8xf32> -> vector<8x8xf32>
    %cst_14 = arith.constant dense<0xFF800000> : vector<8xf32>
    %43 = vector.multi_reduction <maximumf>, %42, %cst_14 [1] : vector<8x8xf32> to vector<8xf32>
    %44 = vector.shape_cast %43 : vector<8xf32> to vector<8x1xf32>
    %45 = vector.broadcast %44 : vector<8x1xf32> to vector<8x8xf32>
    %46 = arith.subf %42, %45 : vector<8x8xf32>
    %47 = math.exp %46 : vector<8x8xf32>
    %cst_15 = arith.constant dense<0.000000e+00> : vector<8xf32>
    %48 = vector.multi_reduction <add>, %47, %cst_15 [1] : vector<8x8xf32> to vector<8xf32>
    %49 = vector.shape_cast %48 : vector<8xf32> to vector<8x1xf32>
    %50 = tpu.reciprocal %49 {approx = true} : vector<8x1xf32> -> vector<8x1xf32>
    %51 = vector.broadcast %50 : vector<8x1xf32> to vector<8x8xf32>
    %52 = arith.mulf %47, %51 : vector<8x8xf32>
    %cst_16 = arith.constant dense<0.000000e+00> : vector<8x32xf32>
    %53 = tpu.matmul %52, %41, %cst_16 {dimension_numbers = #tpu.dot_dimension_numbers<[1], [0], [0], [1], [0, 0, 1, 1], [], []>} : vector<8x8xf32>, vector<8x32xf32>, vector<8x32xf32> -> vector<8x32xf32>
    %54 = vector.extract_strided_slice %6 {offsets = [0, 96], sizes = [8, 32], strides = [1, 1]} : vector<8x128xf32> to vector<8x32xf32>
    %55 = vector.extract_strided_slice %7 {offsets = [0, 96], sizes = [8, 32], strides = [1, 1]} : vector<8x128xf32> to vector<8x32xf32>
    %56 = vector.extract_strided_slice %8 {offsets = [0, 96], sizes = [8, 32], strides = [1, 1]} : vector<8x128xf32> to vector<8x32xf32>
    %cst_17 = arith.constant dense<0.000000e+00> : vector<8x8xf32>
    %57 = tpu.matmul %54, %55, %cst_17 {dimension_numbers = #tpu.dot_dimension_numbers<[1], [1], [0], [0], [0, 0, 1, 0], [], []>} : vector<8x32xf32>, vector<8x32xf32>, vector<8x8xf32> -> vector<8x8xf32>
    %cst_18 = arith.constant dense<0xFF800000> : vector<8xf32>
    %58 = vector.multi_reduction <maximumf>, %57, %cst_18 [1] : vector<8x8xf32> to vector<8xf32>
    %59 = vector.shape_cast %58 : vector<8xf32> to vector<8x1xf32>
    %60 = vector.broadcast %59 : vector<8x1xf32> to vector<8x8xf32>
    %61 = arith.subf %57, %60 : vector<8x8xf32>
    %62 = math.exp %61 : vector<8x8xf32>
    %cst_19 = arith.constant dense<0.000000e+00> : vector<8xf32>
    %63 = vector.multi_reduction <add>, %62, %cst_19 [1] : vector<8x8xf32> to vector<8xf32>
    %64 = vector.shape_cast %63 : vector<8xf32> to vector<8x1xf32>
    %65 = tpu.reciprocal %64 {approx = true} : vector<8x1xf32> -> vector<8x1xf32>
    %66 = vector.broadcast %65 : vector<8x1xf32> to vector<8x8xf32>
    %67 = arith.mulf %62, %66 : vector<8x8xf32>
    %cst_20 = arith.constant dense<0.000000e+00> : vector<8x32xf32>
    %68 = tpu.matmul %67, %56, %cst_20 {dimension_numbers = #tpu.dot_dimension_numbers<[1], [0], [0], [1], [0, 0, 1, 1], [], []>} : vector<8x8xf32>, vector<8x32xf32>, vector<8x32xf32> -> vector<8x32xf32>
    %69 = tpu.concatenate %23, %38, %53, %68 in 1 : vector<8x32xf32>, vector<8x32xf32>, vector<8x32xf32>, vector<8x32xf32> -> vector<8x128xf32>
    %c0_21 = arith.constant 0 : index
    %c0_22 = arith.constant 0 : index
    %70 = vector.load %arg3[%c0_21, %c0_22] : memref<128x128xf32, #tpu.memory_space<vmem>>, vector<128x128xf32>
    %cst_23 = arith.constant dense<0.000000e+00> : vector<8x128xf32>
    %71 = tpu.matmul %69, %70, %cst_23 {dimension_numbers = #tpu.dot_dimension_numbers<[1], [0], [0], [1], [0, 0, 1, 1], [], []>} : vector<8x128xf32>, vector<128x128xf32>, vector<8x128xf32> -> vector<8x128xf32>
    %c0_24 = arith.constant 0 : index
    %c0_25 = arith.constant 0 : index
    %72 = vector.load %arg4[%c0_24, %c0_25] : memref<1x128xf32, #tpu.memory_space<vmem>>, vector<1x128xf32>
    %73 = vector.broadcast %72 : vector<1x128xf32> to vector<8x128xf32>
    %74 = arith.addf %71, %73 : vector<8x128xf32>
    %c0_26 = arith.constant 0 : index
    %c0_27 = arith.constant 0 : index
    %c0_28 = arith.constant 0 : index
    %75 = vector.load %arg5[%c0_26, %c0_27, %c0_28] : memref<1x8x128xf32, #tpu.memory_space<vmem>>, vector<1x8x128xf32>
    %76 = vector.shape_cast %75 : vector<1x8x128xf32> to vector<8x128xf32>
    %77 = vector.shape_cast %74 : vector<8x128xf32> to vector<1x8x128xf32>
    tpu.vector_store %arg5[%c0_26, %c0_27, %c0_28], %77 {strides = array<i32>} : memref<1x8x128xf32, #tpu.memory_space<vmem>>, vector<1x8x128xf32>,
    return
  }
  func.func @transform_0(%arg0: i32) -> (i32, i32, i32) {
    %c0_i32 = arith.constant 0 : i32
    %c0_i32_0 = arith.constant 0 : i32
    %c0_i32_1 = arith.constant 0 : i32
    return %arg0, %c0_i32, %c0_i32_0 : i32, i32, i32
  }
  func.func @transform_1(%arg0: i32) -> (i32, i32) {
    %c0_i32 = arith.constant 0 : i32
    %c0_i32_0 = arith.constant 0 : i32
    %c0_i32_1 = arith.constant 0 : i32
    return %c0_i32, %c0_i32_0 : i32, i32
  }
  func.func @transform_2(%arg0: i32) -> (i32, i32) {
    %c0_i32 = arith.constant 0 : i32
    %c0_i32_0 = arith.constant 0 : i32
    %c0_i32_1 = arith.constant 0 : i32
    return %c0_i32, %c0_i32_0 : i32, i32
  }
  func.func @transform_3(%arg0: i32) -> (i32, i32) {
    %c0_i32 = arith.constant 0 : i32
    %c0_i32_0 = arith.constant 0 : i32
    %c0_i32_1 = arith.constant 0 : i32
    return %c0_i32, %c0_i32_0 : i32, i32
  }
  func.func @transform_4(%arg0: i32) -> (i32, i32, i32) {
    %c0_i32 = arith.constant 0 : i32
    %c0_i32_0 = arith.constant 0 : i32
    %c0_i32_1 = arith.constant 0 : i32
    return %arg0, %c0_i32, %c0_i32_0 : i32, i32, i32
  }
}

</mosaic_0001>

<bundles_post_ra>
// kernel: tpu_custom_call.1
= control target key start
LH: loop header
LB: loop body
LE: loop exit
PB: predicated region body
PF: predicated region fallthrough
CT: control target
= control target key end

     0   :  { %9 = vsyncpa [#allocation3], 0  ;;  %s1288_s0 = inlined_call_operand.hbm [shape: f32[2,8,128], index: 0, kind: input, shape index: {}]   ;;  %s1289_s1 = inlined_call_operand.hbm [shape: f32[128,384], index: 1, kind: input, shape index: {}]   ;;  %s1290_s2 = inlined_call_operand.hbm [shape: f32[128,128], index: 2, kind: input, shape index: {}]   ;;  %s1291_s3 = inlined_call_operand.vmem [shape: f32[1,128], index: 3, kind: input, shape index: {}]   ;;  %s1292_s4 = inlined_call_operand.hbm [shape: f32[2,8,128], index: 4, kind: output, shape index: {}]  }
   0x1   :  { %11 = vsyncpa [#allocation3 + $0x1], 0 }
   0x2   :  { %12 = vsyncpa [#allocation6], 0 }
   0x3   :  { %13 = vsyncpa [#allocation4], 0 }
   0x4   :  { %15 = vsyncpa [#allocation4 + $0x1], 0  ;;  %s1094_s15 = smov 0   ;;  %s1096_s16 = smov 0  }
   0x5   :  { %s1098_s17 = smov 0   ;;  %s1100_s18 = smov 0  }
   0x6 LB: > { %s152_s21 = sshll.u32 %s1289_s1, 4  ;;  %s1118_s22 = sadd.s32 4294967295, %s1058_s18   ;;  %s1058_s18 = sphi %s1100_s18, %s1303_s18   ;;  %s1054_s17 = sphi %s1098_s17, %s1302_s17   ;;  %s1050_s16 = sphi %s1096_s16, %s1301_s16   ;;  %s1046_s15 = sphi %s1094_s15, %s1300_s15   ;;  %s153_s21 = int_to_ptr.hbm [resolvable:$true] %s152_s21 }
   0x7   : > { %p780_p0 = scmp.ge.s32.totalorder %s1058_s18, 1  ;;  %p42_p1 = scmp.eq.s32.totalorder %s1118_s22, 0 }
   0x8   : > { %p141_p2 = scmp.lt.s32.totalorder %s1058_s18, 3  ;;  %s1060_s24 = smov [#allocation5]  }
   0x9   : > { %s154_s25 = sshll.u32 %s1060_s24, 4  ;;  %s166_s28 = sshll.u32 %s1290_s2, 4  ;;  %s155_s25 = int_to_ptr.vmem [resolvable:$true] %s154_s25  ;;  %s167_s28 = int_to_ptr.hbm [resolvable:$true] %s166_s28 }
   0xa   : > { %p1123_p3 = pnand %p780_p0, %p141_p2  ;;  %s1061_s29 = smov [#allocation7]  }
   0xb   : > { %s168_s30 = sshll.u32 %s1061_s29, 4  ;;  %s1062_s5 = smov 384   ;;  %s169_s30 = int_to_ptr.vmem [resolvable:$true] %s168_s30 }
   0xc   : > { %p819_p4 = pneg %p1123_p3  ;;  %s1063_s6 = smov 24  }
   0xd   : > { %s1064_s7 = smov 128   ;;  %s1065_s8 = smov 8  }
   0xe   : > { %p820_p6 = pnand %p819_p4, %p42_p1  ;;  %s779_s9 = sadd.s32 4294967294, %s1058_s18  }
   0xf   : > { %s1137_s10 = sadd.s32 1, %s1058_s18   ;;  %s28_s12 = sadd.s32 1, %s1054_s17 }
  0x10   : > { %822 = dma.hbm_to_vmem [thread:$0]  (!%p820_p6), %s153_s21, 6144, %s155_s25, [#allocation6], %s1062_s5, %s1062_s5, %s1063_s6  }
  0x11   : > { %825 = dma.hbm_to_vmem [thread:$0]  (!%p820_p6), %s167_s28, 2048, %s169_s30, [#allocation6], %s1064_s7, %s1064_s7, %s1065_s8  }
  0x12   : > { %s25_s11 = ssub.s32 %s1058_s18, %s1137_s10  ;;  %p35_p8 = scmp.ne.s32.totalorder %s1054_s17, %s1050_s16 }
  0x13   : > { %p26_p7 = scmp.eq.s32.totalorder %s25_s11, 0  ;;  %p36_p9 = scmp.eq.s32.totalorder %s1058_s18, 0 }
  0x14   : > { %p41_p10 = scmp.ne.s32.totalorder %s1050_s16, %s1046_s15  ;;  %p128_p13 = scmp.eq.s32.totalorder %s1118_s22, 1 }
  0x15   : > { %s1148_s13 = scalar_select %p26_p7, %s1054_s17, %s28_s12  }
  0x16   : > { %p1150_p11 = por %p36_p9, %p35_p8  ;;  %p1156_p12 = por %p42_p1, %p41_p10 }
  0x17   : > { %p134_p0 = scmp.eq.s32.totalorder %s779_s9, 1  ;;  %p836_p2 = scmp.lt.s32.totalorder %s1058_s18, 2 }
  0x18   : > { %s185_s20 = sand.u32 1, %s1054_s17   ;;  %p1163_p4 = por %p128_p13, %p35_p8 }
  0x19   : > { %p1167_p6 = por %p134_p0, %p41_p10  ;;  %s784_s25 = sshll.u32 %s185_s20, 3 }
  0x1a   : > { %s785_s26 = sshll.u32 %s1058_s18, 3  ;;  %s189_s30 = scalar_lea.vmem [#allocation2], %s784_s25 }
  0x1b   : > { %s193_s29 = scalar_lea.hbm %s1288_s0, %s785_s26  ;;  %s197_s5 = sshll.u32 %s189_s30, 4  ;;  %s198_s5 = int_to_ptr.vmem [resolvable:$true] %s197_s5 }
  0x1c   : > { %s195_s6 = sshll.u32 %s193_s29, 4  ;;  %p1177_p7 = pnand %p836_p2, %p1150_p11  ;;  %s196_s6 = int_to_ptr.hbm [resolvable:$true] %s195_s6 }
  0x1d   : > { %s186_s8 = scalar_lea.sflag [#allocation3], %s185_s20  ;;  %s958_s9 = sshra.s32 %s196_s6, 4  ;;  %s959_s9 = int_to_ptr.hbm [resolvable:$true] %s958_s9 }
  0x1e   : > { %s960_s11 = scalar_lea.hbm %s959_s9, 8  ;;  %p962_p9 = pneg %p1177_p7 }
  0x1f   : > { %p961_p8 = scmp.ne.s32.totalorder %s959_s9, %s960_s11  ;;  %s965_s26 = scalar_lea.hbm %s1288_s0, 16 }
  0x20   : > { %p966_p11 = scmp.lt.s32.totalorder %s959_s9, %s1288_s0  ;;  %p967_p0 = scmp.lt.s32.totalorder %s965_s26, %s960_s11 }
  0x21   : > { %p963_p10 = pnand %p962_p9, %p961_p8 }
  0x22   : > { %p968_p2 = por %p967_p0, %p966_p11 }
  0x23   : > { %p964_p13 = pneg %p963_p10 }
  0x25   : > { %p969_p5 = pnand %p968_p2, %p964_p13 }
  0x27   : > { %972 = shalt.err (!%p969_p5)
}
  0x28   : > { %829 = dma.hbm_to_vmem [thread:$0]  (!%p1177_p7), %s196_s6, 128, %s198_s5, %s186_s8  }
  0x29   : > { %206 = sbr.rel (%p1123_p3) target bundleno = 1498 (0x5da), region = 36  ;;  %s1194_s20 = sand.u32 (!%p1123_p3), 1, %s1050_s16  }
  0x2a   : > { %s787_s28 = sshll.u32 (!%p1123_p3), %s1194_s20, 3  ;;  %s209_s29 = scalar_lea.sflag (!%p1123_p3), [#allocation3], %s1194_s20 }
  0x2b   : > { %s1200_s30 = scalar_lea.vmem (!%p1123_p3), [#allocation2], %s787_s28 }
  0x2e   : > { %1033 = dma.done.wait (%p1156_p12), %s209_s29, 128  }
  0x2f   : > { %1035 = vsyncadd (%p1156_p12), %s209_s29, 4294967168 }
  0x30   : > { %1037 = dma.done.wait (%p42_p1), [#allocation6], 8192  }
  0x31   : > { %1039 = vsyncadd (%p42_p1), [#allocation6], 4294959104  ;;  %v295_v0 = vld [vmem:[#allocation5 + $0x170] sm:$0xff]  ;;  %v296_v1 = vld [vmem:[#allocation5 + $0x178] sm:$0xff]  ;;  %vm358_vm0 = vcmask 261120   ;;  %s1066_s23 = smov 96  }
  0x32   : > { %v294_v2 = vld [vmem:[#allocation5 + $0x168] sm:$0xff]  ;;  %317 = vmatpush.msra.mxu1 %v295_v0  ;;  %337 = vmatpush.msra.mxu2 %v296_v1  ;;  %v292_v3 = vld [vmem:[#allocation5 + $0x158] sm:$0xff]  ;;  %v293_v4 = vld [vmem:[#allocation5 + $0x160] sm:$0xff]  ;;  %s1067_s19 = smov 64   ;;  %s1068_s5 = smov 32   ;;  %vm385_vm1 = vcmask 64512  }
  0x33   : > { %v291_v5 = vld [vmem:[#allocation5 + $0x150] sm:$0xff]  ;;  %297 = vmatpush.msra.mxu0 %v294_v2  ;;  %v289_v6 = vld [vmem:[#allocation5 + $0x140] sm:$0xff]  ;;  %v290_v7 = vld [vmem:[#allocation5 + $0x148] sm:$0xff]  ;;  %vm629_vm2 = vcmask 523264   ;;  %vm631_vm3 = vcmask 785408   ;;  %s804_s6 = sshll.u32 %s1118_s22, 3 }
  0x34   : > { %318 = vmatpush.msra.mxu1 %v292_v3  ;;  %338 = vmatpush.msra.mxu2 %v293_v4  ;;  %v288_v8 = vld [vmem:[#allocation5 + $0x138] sm:$0xff]  ;;  %v286_v9 = vld [vmem:[#allocation5 + $0x128] sm:$0xff]  ;;  %v287_v10 = vld [vmem:[#allocation5 + $0x130] sm:$0xff]  ;;  %s685_s9 = scalar_lea.hbm %s1292_s4, %s804_s6  ;;  %s247_s25 = scalar_lea.vmem [#allocation8], %s787_s28 }
  0x35   : > { %298 = vmatpush.msra.mxu0 %v291_v5  ;;  %v285_v11 = vld [vmem:[#allocation5 + $0x120] sm:$0xff]  ;;  %v283_v12 = vld [vmem:[#allocation5 + $0x110] sm:$0xff]  ;;  %v284_v13 = vld [vmem:[#allocation5 + $0x118] sm:$0xff]  ;;  %s687_s26 = sshll.u32 %s247_s25, 4  ;;  %s689_s27 = sshll.u32 %s685_s9, 4  ;;  %s688_s26 = int_to_ptr.vmem [resolvable:$true] %s687_s26  ;;  %s690_s27 = int_to_ptr.hbm [resolvable:$true] %s689_s27 }
  0x36   : > { %319 = vmatpush.msra.mxu1 %v289_v6  ;;  %339 = vmatpush.msra.mxu2 %v290_v7  ;;  %v282_v14 = vld [vmem:[#allocation5 + $0x108] sm:$0xff]  ;;  %v280_v15 = vld [vmem:[#allocation5 + $0xf8] sm:$0xff]  ;;  %v281_v16 = vld [vmem:[#allocation5 + $0x100] sm:$0xff]  ;;  %s675_s14 = scalar_lea.sflag [#allocation4], %s1194_s20  ;;  %s1002_s22 = sshra.s32 %s690_s27, 4  ;;  %s1003_s22 = int_to_ptr.hbm [resolvable:$true] %s1002_s22 }
  0x37   : > { %299 = vmatpush.msra.mxu0 %v288_v8  ;;  %v279_v17 = vld [vmem:[#allocation5 + $0xf0] sm:$0xff]  ;;  %v277_v18 = vld [vmem:[#allocation5 + $0xe0] sm:$0xff]  ;;  %v278_v19 = vld [vmem:[#allocation5 + $0xe8] sm:$0xff]  ;;  %s1004_s29 = scalar_lea.hbm %s1003_s22, 8  ;;  %p1009_p12 = scmp.lt.s32.totalorder %s1003_s22, %s1292_s4 }
  0x38   : > { %320 = vmatpush.msra.mxu1 %v286_v9  ;;  %340 = vmatpush.msra.mxu2 %v287_v10  ;;  %v276_v20 = vld [vmem:[#allocation5 + $0xd8] sm:$0xff]  ;;  %v274_v21 = vld [vmem:[#allocation5 + $0xc8] sm:$0xff]  ;;  %v275_v22 = vld [vmem:[#allocation5 + $0xd0] sm:$0xff]  ;;  %p1005_p1 = scmp.ne.s32.totalorder %s1003_s22, %s1004_s29 }
  0x39   : > { %300 = vmatpush.msra.mxu0 %v285_v11  ;;  %v273_v23 = vld [vmem:[#allocation5 + $0xc0] sm:$0xff]  ;;  %v271_v24 = vld [vmem:[#allocation5 + $0xb0] sm:$0xff]  ;;  %v272_v25 = vld [vmem:[#allocation5 + $0xb8] sm:$0xff] }
  0x3a   : > { %321 = vmatpush.msra.mxu1 %v283_v12  ;;  %341 = vmatpush.msra.mxu2 %v284_v13  ;;  %v270_v26 = vld [vmem:[#allocation5 + $0xa8] sm:$0xff]  ;;  %v268_v27 = vld [vmem:[#allocation5 + $0x98] sm:$0xff]  ;;  %v269_v28 = vld [vmem:[#allocation5 + $0xa0] sm:$0xff]  ;;  %p1006_p3 = pnand %p1005_p1, %p1163_p4 }
  0x3b   : > { %301 = vmatpush.msra.mxu0 %v282_v14  ;;  %v267_v29 = vld [vmem:[#allocation5 + $0x90] sm:$0xff]  ;;  %v265_v30 = vld [vmem:[#allocation5 + $0x80] sm:$0xff]  ;;  %v266_v31 = vld [vmem:[#allocation5 + $0x88] sm:$0xff] }
  0x3c   : > { %322 = vmatpush.msra.mxu1 %v280_v15  ;;  %342 = vmatpush.msra.mxu2 %v281_v16  ;;  %v264_v32 = vld [vmem:[#allocation5 + $0x78] sm:$0xff]  ;;  %v262_v33 = vld [vmem:[#allocation5 + $0x68] sm:$0xff]  ;;  %v263_v34 = vld [vmem:[#allocation5 + $0x70] sm:$0xff]  ;;  %p1007_p5 = pneg %p1006_p3 }
  0x3d   : > { %302 = vmatpush.msra.mxu0 %v279_v17  ;;  %v261_v35 = vld [vmem:[#allocation5 + $0x60] sm:$0xff]  ;;  %v259_v36 = vld [vmem:[#allocation5 + $0x50] sm:$0xff]  ;;  %v260_v37 = vld [vmem:[#allocation5 + $0x58] sm:$0xff] }
  0x3e   : > { %323 = vmatpush.msra.mxu1 %v277_v18  ;;  %343 = vmatpush.msra.mxu2 %v278_v19  ;;  %v258_v38 = vld [vmem:[#allocation5 + $0x48] sm:$0xff]  ;;  %v256_v39 = vld [vmem:[#allocation5 + $0x38] sm:$0xff]  ;;  %v257_v40 = vld [vmem:[#allocation5 + $0x40] sm:$0xff] }
  0x3f   : > { %303 = vmatpush.msra.mxu0 %v276_v20  ;;  %v255_v41 = vld [vmem:[#allocation5 + $0x30] sm:$0xff]  ;;  %v253_v42 = vld [vmem:[#allocation5 + $0x20] sm:$0xff]  ;;  %v254_v43 = vld [vmem:[#allocation5 + $0x28] sm:$0xff] }
  0x40   : > { %324 = vmatpush.msra.mxu1 %v274_v21  ;;  %344 = vmatpush.msra.mxu2 %v275_v22  ;;  %v252_v44 = vld [vmem:[#allocation5 + $0x18] sm:$0xff]  ;;  %v250_v45 = vld [vmem:[#allocation5 + $0x8] sm:$0xff]  ;;  %v251_v46 = vld [vmem:[#allocation5 + $0x10] sm:$0xff] }
  0x41   : > { %304 = vmatpush.msra.mxu0 %v273_v23  ;;  %v249_v47 = vld [vmem:[#allocation5] sm:$0xff]  ;;  %v248_v48 = vld [vmem:[%s1200_s30] sm:$0xff] }
  0x42   : > { %325 = vmatpush.msra.mxu1 %v271_v24  ;;  %345 = vmatpush.msra.mxu2 %v272_v25 }
  0x43   : > { %305 = vmatpush.msra.mxu0 %v270_v26 }
  0x44   : > { %326 = vmatpush.msra.mxu1 %v268_v27  ;;  %346 = vmatpush.msra.mxu2 %v269_v28 }
  0x45   : > { %306 = vmatpush.msra.mxu0 %v267_v29 }
  0x46   : > { %327 = vmatpush.msra.mxu1 %v265_v30  ;;  %347 = vmatpush.msra.mxu2 %v266_v31 }
  0x47   : > { %307 = vmatpush.msra.mxu0 %v264_v32 }
  0x48   : > { %328 = vmatpush.msra.mxu1 %v262_v33  ;;  %348 = vmatpush.msra.mxu2 %v263_v34 }
  0x49   : > { %308 = vmatpush.msra.mxu0 %v261_v35 }
  0x4a   : > { %329 = vmatpush.msra.mxu1 %v259_v36  ;;  %349 = vmatpush.msra.mxu2 %v260_v37 }
  0x4b   : > { %309 = vmatpush.msra.mxu0 %v258_v38 }
  0x4c   : > { %330 = vmatpush.msra.mxu1 %v256_v39  ;;  %350 = vmatpush.msra.mxu2 %v257_v40  ;;  %v648_v39 = vld [vmem:[#allocation7 + $0x78] sm:$0xff]  ;;  %v647_v40 = vld [vmem:[#allocation7 + $0x70] sm:$0xff] }
  0x4d   : > { %310 = vmatpush.msra.mxu0 %v255_v41  ;;  %v646_v41 = vld [vmem:[#allocation7 + $0x68] sm:$0xff] }
  0x4e   : > { %331 = vmatpush.msra.mxu1 %v253_v42  ;;  %351 = vmatpush.msra.mxu2 %v254_v43  ;;  %v645_v42 = vld [vmem:[#allocation7 + $0x60] sm:$0xff]  ;;  %v644_v43 = vld [vmem:[#allocation7 + $0x58] sm:$0xff] }
  0x4f   : > { %311 = vmatpush.msra.mxu0 %v252_v44  ;;  %v643_v44 = vld [vmem:[#allocation7 + $0x50] sm:$0xff] }
  0x50   : > { %332 = vmatpush.msra.mxu1 %v250_v45  ;;  %352 = vmatpush.msra.mxu2 %v251_v46  ;;  %v642_v45 = vld [vmem:[#allocation7 + $0x48] sm:$0xff]  ;;  %v641_v46 = vld [vmem:[#allocation7 + $0x40] sm:$0xff] }
  0x51   : > { %312 = vmatpush.msra.mxu0 %v249_v47  ;;  %333 = vmatmul.f32.vlgmr.msra.gmra.mxu1 %v248_v48  ;;  %v640_v47 = vld [vmem:[#allocation7 + $0x38] sm:$0xff] }
  0x52   : > { %353 = vmatmul.f32.vlgmr.msra.gmra.mxu2 %v248_v48  ;;  %313 = vmatmul.f32.vlgmr.msra.gmra.mxu0 %v248_v48  ;;  %v639_v48 = vld [vmem:[#allocation7 + $0x30] sm:$0xff] }
  0xce   : > { %v334_v49 = vpop.f32.mrf.mxu1 }
  0xcf   : > { %422 = vrot.lane.b32.xlu0 %v334_v49, %s1066_s23  ;;  %v314_v50 = vpop.f32.mrf.mxu0  ;;  %791 = vmatpush.xpose.msk.msrb.mxu0 %vm358_vm0, %v334_v49 }
  0xd0   : > { %v357_v51 = vmul.f32 0.17677669, %v314_v50 }
  0xd2   : > { %792 = vmatmul.msk.f32.vlgmr.msrb.gmra.mxu0 %vm358_vm0, %v357_v51 }
  0xd5   : > { %v1214_v52 = vpop.f32.mrf.mxu2 }
  0xd6   : > { %460 = vrot.lane.b32.xlu2 %v1214_v52, %s1066_s23  ;;  %415 = vmatpush.msrb.mxu2 %v1214_v52 }
  0xd7   : > { %420 = vrot.lane.b32.xlu0 %v357_v51, %s1066_s23 }
  0xde   : > { %488 = vrot.lane.b32.xlu2 %v334_v49, %s1067_s19 }
  0xdf   : > { %553 = vrot.lane.b32.xlu0 %v334_v49, %s1068_s5  ;;  %v638_v49 = vld [vmem:[#allocation7 + $0x28] sm:$0xff] }
  0xe6   : > { %551 = vrot.lane.b32.xlu2 %v357_v51, %s1068_s5 }
 0x130   : > { %v461_v53 = vpop.permute.xlu2 %460 }
 0x131   : > { %481 = vmatpush.msra.mxu3 %v461_v53  ;;  %v637_v53 = vld [vmem:[#allocation7 + $0x20] sm:$0xff] }
 0x138   : > { %v489_v54 = vpop.permute.xlu2 %488 }
 0x139   : > { %797 = vmatpush.xpose.msk.msrb.mxu3 %vm358_vm0, %v489_v54  ;;  %v636_v54 = vld [vmem:[#allocation7 + $0x18] sm:$0xff] }
 0x140   : > { %v552_v60 = vpop.permute.xlu2 %551 }
 0x141   : > { %v423_v55 = vpop.permute.xlu0 %422 }
 0x142   : > { %794 = vmatpush.xpose.msk.msrb.mxu1 %vm358_vm0, %v423_v55  ;;  %v635_v55 = vld [vmem:[#allocation7 + $0x10] sm:$0xff] }
 0x149   : > { %v421_v56 = vpop.permute.xlu0 %420 }
 0x14a   : > { %795 = vmatmul.msk.f32.vlgmr.msrb.gmra.mxu1 %vm358_vm0, %v421_v56  ;;  %v634_v56 = vld [vmem:[#allocation7 + $0x8] sm:$0xff] }
 0x14f   : > { %v382_v57 = vpop.f32.mrf.mxu0 }
 0x150   : > { %v386_v58 = vsel %vm385_vm1, %v382_v57, -inf }
 0x151   : > { %v554_v59 = vpop.permute.xlu0 %553  ;;  %387 = vmax.xlane.f32.xlu0 %v386_v58 }
 0x152   : > { %800 = vmatpush.xpose.msk.msra.mxu1 %vm358_vm0, %v554_v59 }
 0x155   : > { %801 = vmatmul.msk.f32.vlgmr.msra.gmra.mxu1 %vm358_vm0, %v552_v60 }
 0x1c4   : > { %v388_v61 = vpop.xlane.xlu0 %387 }
 0x1c5   : > { %v389_v0 = vsub.f32 %v382_v57, %v388_v61  ;;  %v633_v57 = vld [vmem:[#allocation7] sm:$0xff] }
 0x1c7   : > { %v445_v62 = vpop.f32.mrf.mxu1  ;;  %v390_v1 = vmul.f32 1.442695, %v389_v0  ;;  %v881_v0 = vld [vmem:[%s1291_s3] ss:$0 sm:$0xff] }
 0x1c8   : > { %v448_v63 = vsel %vm385_vm1, %v445_v62, -inf }
 0x1c9   : > { %449 = vmax.xlane.f32.xlu1 %v448_v63  ;;  %882 = vpow2.f32 %v390_v1 }
 0x1cf   : > { %v883_v4 = vpop.eup %882 }
 0x1d0   : > { %v392_v5 = vsel %vm385_vm1, %v883_v4, 0.0 }
 0x1d2   : > { %v576_v2 = vpop.f32.mrf.mxu1 }
 0x1d3   : > { %v579_v3 = vsel %vm385_vm1, %v576_v2, -inf }
 0x1d4   : > { %580 = vmax.xlane.f32.xlu2 %v579_v3 }
 0x1dc   : > { %393 = vadd.xlane.f32.xlu2 %v392_v5 }
 0x23c   : > { %v450_v6 = vpop.xlane.xlu1 %449 }
 0x23d   : > { %v451_v7 = vsub.f32 %v445_v62, %v450_v6 }
 0x23f   : > { %v452_v8 = vmul.f32 1.442695, %v451_v7 }
 0x241   : > { %884 = vpow2.f32 %v452_v8 }
 0x247   : > { %v885_v9 = vpop.eup %884  ;;  %v581_v10 = vpop.xlane.xlu2 %580 }
 0x248   : > { %v582_v11 = vsub.f32 %v576_v2, %v581_v10  ;;  %v454_v12 = vsel %vm385_vm1, %v885_v9, 0.0 }
 0x249   : > { %455 = vadd.xlane.f32.xlu1 %v454_v12 }
 0x24a   : > { %v583_v13 = vmul.f32 1.442695, %v582_v11 }
 0x24c   : > { %886 = vpow2.f32 %v583_v13 }
 0x24f   : > { %v394_v14 = vpop.xlane.xlu2 %393 }
 0x250   : > { %888 = vrcp.f32 %v394_v14 }
 0x252   : > { %v887_v15 = vpop.eup %886 }
 0x253   : > { %v585_v16 = vsel %vm385_vm1, %v887_v15, 0.0 }
 0x254   : > { %586 = vadd.xlane.f32.xlu0 %v585_v16 }
 0x256   : > { %v889_v17 = vpop.eup %888 }
 0x257   : > { %v396_v18 = vmul.f32 %v889_v17, %v883_v4 }
 0x259   : > { %793 = vmatmul.msk.f32.vlgmr.msrb.gmra.mxu2 %vm385_vm1, %v396_v18 }
 0x262   : > { %486 = vrot.lane.b32.xlu1 %v357_v51, %s1067_s19 }
 0x268   : > { %590 = vrot.lane.b32.xlu0 %v1214_v52, %s1068_s5 }
 0x2bc   : > { %v456_v19 = vpop.xlane.xlu1 %455 }
 0x2bd   : > { %890 = vrcp.f32 %v456_v19 }
 0x2c3   : > { %v891_v20 = vpop.eup %890 }
 0x2c4   : > { %v458_v21 = vmul.f32 %v891_v20, %v885_v9 }
 0x2c6   : > { %796 = vmatmul.msk.f32.vlgmr.msra.gmra.mxu3 %vm385_vm1, %v458_v21 }
 0x2c7   : > { %v587_v22 = vpop.xlane.xlu0 %586  ;;  %653 = vmatpush.msra.mxu3 %v648_v39 }
 0x2c8   : > { %892 = vrcp.f32 %v587_v22 }
 0x2c9   : > { %654 = vmatpush.msra.mxu3 %v647_v40 }
 0x2cb   : > { %655 = vmatpush.msra.mxu3 %v646_v41 }
 0x2cd   : > { %656 = vmatpush.msra.mxu3 %v645_v42 }
 0x2ce   : > { %v893_v24 = vpop.eup %892 }
 0x2cf   : > { %v589_v25 = vmul.f32 %v893_v24, %v887_v15  ;;  %657 = vmatpush.msra.mxu3 %v644_v43 }
 0x2d1   : > { %658 = vmatpush.msra.mxu3 %v643_v44 }
 0x2d3   : > { %659 = vmatpush.msra.mxu3 %v642_v45 }
 0x2d4   : > { %v487_v23 = vpop.permute.xlu1 %486 }
 0x2d5   : > { %798 = vmatmul.msk.f32.vlgmr.msrb.gmra.mxu3 %vm358_vm0, %v487_v23 }
 0x2d6   : > { %660 = vmatpush.msra.mxu3 %v641_v46 }
 0x2d8   : > { %661 = vmatpush.msra.mxu3 %v640_v47 }
 0x2da   : > { %v591_v26 = vpop.permute.xlu0 %590  ;;  %662 = vmatpush.msra.mxu3 %v639_v48 }
 0x2db   : > { %611 = vmatpush.msra.mxu2 %v591_v26 }
 0x2dc   : > { %802 = vmatmul.msk.f32.vlgmr.msra.gmra.mxu2 %vm385_vm1, %v589_v25  ;;  %663 = vmatpush.msra.mxu3 %v638_v49  ;;  %v417_v50 = vpop.f32.mrf.mxu2 }
 0x2de   : > { %664 = vmatpush.msra.mxu3 %v637_v53 }
 0x2e0   : > { %665 = vmatpush.msra.mxu3 %v636_v54 }
 0x2e2   : > { %666 = vmatpush.msra.mxu3 %v635_v55 }
 0x2e4   : > { %667 = vmatpush.msra.mxu3 %v634_v56 }
 0x2e6   : > { %668 = vmatpush.msra.mxu3 %v633_v57 }
 0x349   : > { %v483_v27 = vpop.f32.mrf.mxu3 }
 0x358   : > { %v511_v28 = vpop.f32.mrf.mxu3 }
 0x359   : > { %v514_v29 = vsel %vm385_vm1, %v511_v28, -inf }
 0x35a   : > { %515 = vmax.xlane.f32.xlu1 %v514_v29 }
 0x373   : > { %617 = vrot.lane.b32.xlu1 %v483_v27, %s1068_s5 }
 0x3cd   : > { %v516_v30 = vpop.xlane.xlu1 %515 }
 0x3ce   : > { %v517_v31 = vsub.f32 %v511_v28, %v516_v30 }
 0x3d0   : > { %v518_v32 = vmul.f32 1.442695, %v517_v31 }
 0x3d2   : > { %894 = vpow2.f32 %v518_v32 }
 0x3d8   : > { %v895_v33 = vpop.eup %894 }
 0x3d9   : > { %v520_v34 = vsel %vm385_vm1, %v895_v33, 0.0 }
 0x3da   : > { %521 = vadd.xlane.f32.xlu2 %v520_v34 }
 0x3e5   : > { %v618_v59 = vpop.permute.xlu1 %617 }
 0x3e6   : > { %v628_v60 = vsel %vm358_vm0, %v417_v50, %v618_v59 }
 0x3f2   : > { %525 = vrot.lane.b32.xlu2 %v1214_v52, %s1067_s19  ;;  %v613_v52 = vpop.f32.mrf.mxu2 }
 0x44d   : > { %v522_v35 = vpop.xlane.xlu2 %521 }
 0x44e   : > { %896 = vrcp.f32 %v522_v35 }
 0x454   : > { %v897_v36 = vpop.eup %896 }
 0x455   : > { %v524_v37 = vmul.f32 %v897_v36, %v895_v33  ;;  %v526_v38 = vpop.permute.xlu2 %525 }
 0x456   : > { %546 = vmatpush.msra.mxu0 %v526_v38 }
 0x457   : > { %799 = vmatmul.msk.f32.vlgmr.msra.gmra.mxu0 %vm385_vm1, %v524_v37 }
 0x4d4   : > { %v548_v51 = vpop.f32.mrf.mxu0 }
 0x4d5   : > { %621 = vrot.lane.b32.xlu0 %v548_v51, %s1067_s19  ;;  %s1008_s19 = scalar_lea.hbm %s1292_s4, 16 }
 0x4d6   : > { %p1010_p7 = scmp.lt.s32.totalorder %s1008_s19, %s1004_s29 }
 0x4d8   : > { %p1011_p8 = por %p1010_p7, %p1009_p12 }
 0x4da   : > { %p1012_p9 = pnand %p1011_p8, %p1007_p5 }
 0x4dd   : > { %625 = vrot.lane.b32.xlu0 %v613_v52, %s1066_s23 }
 0x547   : > { %v622_v58 = vpop.permute.xlu0 %621 }
 0x548   : > { %v630_v61 = vsel %vm629_vm2, %v628_v60, %v622_v58 }
 0x54f   : > { %v626_v62 = vpop.permute.xlu0 %625 }
 0x550   : > { %v632_v63 = vsel %vm631_vm3, %v630_v61, %v626_v62 }
 0x551   : > { %669 = vmatmul.f32.vlgmr.msra.gmra.mxu3 %v632_v63 }
 0x5d4   : > { %v670_v1 = vpop.f32.mrf.mxu3 }
 0x5d5   : > { %v671_v2 = vadd.f32 %v881_v0, %v670_v1 }
 0x5d7   : > { %673 = vst [vmem:[%s247_s25] sm:$0xff] %v671_v2 }
 0x5d8   : > { %1015 = shalt.err (!%p1012_p9)
}
 0x5d9   : > { %817 = dma.vmem_to_hbm [thread:$0]  (%p1163_p4), %s688_s26, 128, %s690_s27, %s675_s14  }
 0x5da PF: > { %s701_s20 = sand.u32 1, %s1046_s15   ;;  %p1299_p10 = scmp.ge.s32.totalorder %s1058_s18, 2 }
 0x5db   : > { %s702_s6 = scalar_lea.sflag [#allocation4], %s701_s20 }
 0x5dc   : > { %p831_p13 = pnand %p1299_p10, %p1167_p6 }
 0x5de   : > { %p832_p11 = pneg %p831_p13 }
 0x5e0   : > { %1041 = dma.done.wait (%p832_p11), %s702_s6, 128  }
 0x5e1   : > { %1043 = vsyncadd (%p832_p11), %s702_s6, 4294967168  ;;  %p18_p0 = scmp.ge.s32.totalorder %s1137_s10, 4   ;;  %s1300_s15 = smov %s1050_s16 }
 0x5e2   : > { %s1301_s16 = smov %s1054_s17  ;;  %s1302_s17 = smov %s1148_s13 }
 0x5e3   : > { %s1303_s18 = smov %s1137_s10  ;;  %20 = sbr.rel (!%p18_p0) target bundleno = 6 (0x6), region = 89 }
 0x5e8   :  { %708 = vsyncpa [#allocation3], 1 }
 0x5e9   :  { %710 = vsyncpa [#allocation3 + $0x1], 1 }
 0x5ea   :  { %711 = vsyncpa [#allocation6], 1 }
 0x5eb   :  { %712 = vsyncpa [#allocation4], 1 }
 0x5ec   :  { %714 = vsyncpa [#allocation4 + $0x1], 1 }

</bundles_post_ra>
